<compile_context>
chip_gen: v5e
topology: v5e:2x2
jax: 0.10.0
libtpu: 0.0.40
codegen_flags: <defaults>
</compile_context>

<pallas_src>
import math
from functools import partial

import jax
import jax.numpy as jnp
from jax import lax
from jax.experimental import pallas as pl
from jax.experimental.pallas import tpu as pltpu

_MASK = -1e30                    # large finite negative (no (-inf)-(-inf) NaNs)
_LOG2E = 1.4426950408889634      # softmax done in base-2 (exp2) inside kernel
_STATS_LANES = 128               # lane-replicated m/l scratch width


# ----------------------------------------------------------------------------
# Hardware-aware sizing helpers
# ----------------------------------------------------------------------------
def _vmem_cap_bytes():
    try:
        return int(pltpu.get_tpu_info().vmem_capacity_bytes)
    except Exception:
        return 64 << 20          # conservative (v7x-sized) fallback


def _vmem_limit_bytes(need_bytes):
    cap = _vmem_cap_bytes()
    ceiling = (cap * 3) // 4     # ~96 MiB on 128 MiB parts, ~48 MiB on v7x
    return int(min(max(need_bytes, 16 << 20), ceiling))


def _sublane_tile(dim, target, itemsize=4):
    """Second-minor tile: dtype-aware multiple of the sublane packing that
    divides `dim`; falls back to the full dim (always a legal block)."""
    align = max(8, 32 // max(1, int(itemsize)))   # 8 f32, 16 bf16, 32 int8/fp8
    t = min(target, dim)
    t -= t % align
    while t >= align and dim % t:
        t -= align
    return t if t >= align and dim % t == 0 else dim


def _lane_tile(dim, target):
    """Minor tile: multiple of 128 dividing `dim`, else the full dim.
    (Full-dim fallback is fine for the model dims used here; huge
    non-128-multiple dims would need explicit edge masking instead.)"""
    t = min(target, dim)
    t -= t % 128
    while t >= 128 and dim % t:
        t -= 128
    return t if t >= 128 and dim % t == 0 else dim


def _proj_tile_targets():
    # Bigger projection tiles on 128 MiB VMEM parts (v5e/v6e); hold back on v7x.
    if _vmem_cap_bytes() >= (100 << 20):
        return 512, 1024, 1024
    return 256, 512, 512


# ----------------------------------------------------------------------------
# Tiled linear (no bias):  y[M, N] = x[M, K] @ w[K, N]
# ----------------------------------------------------------------------------
def _matmul_kernel(x_ref, w_ref, o_ref, acc_ref):
    k = pl.program_id(2)
    prod = jnp.dot(x_ref[...], w_ref[...], preferred_element_type=jnp.float32)

    @pl.when(k == 0)
    def _first():                      # store directly: no zero-fill + add
        acc_ref[...] = prod

    @pl.when(k > 0)
    def _accum():
        acc_ref[...] += prod

    @pl.when(k == pl.num_programs(2) - 1)
    def _store():
        o_ref[...] = acc_ref[...].astype(o_ref.dtype)


def linear(x2d, w, *, tm=None, tn=None, tk=None):
    M, K = x2d.shape
    K2, N = w.shape
    assert K == K2
    tmt, tnt, tkt = _proj_tile_targets()
    itm = x2d.dtype.itemsize
    tm = _sublane_tile(M, tm or tmt, itm)
    tn = _lane_tile(N, tn or tnt)
    tk = _lane_tile(K, tk or tkt)
    grid = (M // tm, N // tn, K // tk)

    need = 2 * (tm * tk + tk * tn + tm * tn) * itm + tm * tn * 4 + (4 << 20)
    cost = pl.CostEstimate(
        flops=int(2 * M * N * K),
        transcendentals=0,
        bytes_accessed=int((M * K + K * N + M * N) * itm),
    )
    return pl.pallas_call(
        _matmul_kernel,
        out_shape=jax.ShapeDtypeStruct((M, N), x2d.dtype),
        grid_spec=pltpu.PrefetchScalarGridSpec(
            num_scalar_prefetch=0,
            grid=grid,
            in_specs=[
                pl.BlockSpec((tm, tk), lambda i, j, k: (i, k)),
                pl.BlockSpec((tk, tn), lambda i, j, k: (k, j)),
            ],
            out_specs=pl.BlockSpec((tm, tn), lambda i, j, k: (i, j)),
            scratch_shapes=[pltpu.VMEM((tm, tn), jnp.float32)],
        ),
        compiler_params=pltpu.CompilerParams(
            dimension_semantics=("parallel", "parallel", "arbitrary"),
            vmem_limit_bytes=_vmem_limit_bytes(need),
        ),
        cost_estimate=cost,
    )(x2d, w)


# ----------------------------------------------------------------------------
# Flash-style causal attention with fused rotary.
# q/k/v: (B*H, T, D).  cos_q/sin_q carry the 1/sqrt(D)*log2(e) scale.
# Grid: (B*H, n_tri_steps) where the second axis walks the lower triangle of
# (q_block, kv_block) pairs via scalar-prefetched index tables.
# ----------------------------------------------------------------------------
def _rot_half(x):
    d2 = x.shape[-1] // 2
    return jnp.concatenate([x[..., d2:], x[..., :d2]], axis=-1)


def _lane_bcast(x, n):
    """x: (rows, 128) with identical values across lanes -> (rows, n)."""
    L = x.shape[-1]
    if n == L:
        return x
    if n < L:
        return x[:, :n]
    reps = (n + L - 1) // L
    return jnp.tile(x, (1, reps))[:, :n]


def _flash_attn_kernel(qt_ref, kt_ref,
                       q_ref, k_ref, v_ref,
                       cq_ref, sq_ref, ck_ref, sk_ref,
                       o_ref,
                       m_sc, l_sc, acc_sc):
    step = pl.program_id(1)
    qi = qt_ref[step]
    ki = kt_ref[step]

    @pl.when(ki == 0)
    def _init():
        m_sc[...] = jnp.full(m_sc.shape, _MASK, m_sc.dtype)
        l_sc[...] = jnp.zeros(l_sc.shape, l_sc.dtype)
        acc_sc[...] = jnp.zeros(acc_sc.shape, acc_sc.dtype)

    # Rotary fused into the q/k tile path; softmax scale (and log2 e) is
    # pre-folded into cq/sq, so no extra scalar multiply is needed.
    q = q_ref[0]
    k = k_ref[0]
    v = v_ref[0]
    q = q * cq_ref[...] + _rot_half(q) * sq_ref[...]
    k = k * ck_ref[...] + _rot_half(k) * sk_ref[...]

    def update(masked):
        s = lax.dot_general(q, k, (((1,), (1,)), ((), ())),
                            preferred_element_type=jnp.float32)
        if masked:  # only the diagonal block pays for the mask (static branch)
            row = lax.broadcasted_iota(jnp.int32, s.shape, 0)
            col = lax.broadcasted_iota(jnp.int32, s.shape, 1)
            s = jnp.where(col > row, _MASK, s)
        m_prev = m_sc[...]                                        # (bq, 128)
        m_next = jnp.maximum(m_prev, jnp.max(s, axis=-1, keepdims=True))
        alpha = jnp.exp2(m_prev - m_next)
        p = jnp.exp2(s - _lane_bcast(m_next, s.shape[-1]))
        l_sc[...] = alpha * l_sc[...] + jnp.sum(p, axis=-1, keepdims=True)
        acc_sc[...] = _lane_bcast(alpha, acc_sc.shape[-1]) * acc_sc[...] + \
            lax.dot_general(p.astype(v.dtype), v, (((1,), (0,)), ((), ())),
                            preferred_element_type=jnp.float32)
        m_sc[...] = m_next

    @pl.when(ki < qi)          # off-diagonal: no mask construction at all
    def _off_diag():
        update(masked=False)

    @pl.when(ki == qi)         # diagonal: mask + finalize (last step for block)
    def _diag_and_finalize():
        update(masked=True)
        inv_l = pl.reciprocal(l_sc[...], approx=False)   # once per q block
        o_ref[0] = (acc_sc[...] * _lane_bcast(inv_l, acc_sc.shape[-1])
                    ).astype(o_ref.dtype)


def flash_causal_attention(q, k, v, cos_q, sin_q, cos_k, sin_k, *, block=256):
    BH, T, D = q.shape
    itm = q.dtype.itemsize
    bq = _sublane_tile(T, block, itm)        # block_q == block_k
    nq = T // bq

    # Flattened lower-triangular (q-block, kv-block) schedule: no dead
    # above-diagonal grid steps (scalar-prefetched int32 index tables).
    qi_list, ki_list = [], []
    for i in range(nq):
        for j in range(i + 1):
            qi_list.append(i)
            ki_list.append(j)
    qi_tab = jnp.asarray(qi_list, dtype=jnp.int32)
    ki_tab = jnp.asarray(ki_list, dtype=jnp.int32)
    grid = (BH, len(qi_list))

    q_spec = pl.BlockSpec((1, bq, D), lambda bh, s, qt, kt: (bh, qt[s], 0))
    kv_spec = pl.BlockSpec((1, bq, D), lambda bh, s, qt, kt: (bh, kt[s], 0))
    rope_q = pl.BlockSpec((bq, D), lambda bh, s, qt, kt: (qt[s], 0))
    rope_k = pl.BlockSpec((bq, D), lambda bh, s, qt, kt: (kt[s], 0))
    o_spec = pl.BlockSpec((1, bq, D), lambda bh, s, qt, kt: (bh, qt[s], 0))

    need = 2 * 8 * bq * D * itm + (2 * bq * _STATS_LANES + bq * D) * 4 + (4 << 20)
    cost = pl.CostEstimate(
        flops=int(2 * BH * T * T * D),            # two matmuls, ~causal half
        transcendentals=int(BH * T * T // 2),     # exp2
        bytes_accessed=int((4 * BH * T * D + 4 * T * D) * itm),
    )
    return pl.pallas_call(
        _flash_attn_kernel,
        out_shape=jax.ShapeDtypeStruct((BH, T, D), q.dtype),
        grid_spec=pltpu.PrefetchScalarGridSpec(
            num_scalar_prefetch=2,
            grid=grid,
            in_specs=[q_spec, kv_spec, kv_spec,
                      rope_q, rope_q, rope_k, rope_k],
            out_specs=o_spec,
            scratch_shapes=[
                pltpu.VMEM((bq, _STATS_LANES), jnp.float32),  # running max
                pltpu.VMEM((bq, _STATS_LANES), jnp.float32),  # running sum
                pltpu.VMEM((bq, D), jnp.float32),             # output accum
            ],
        ),
        compiler_params=pltpu.CompilerParams(
            dimension_semantics=("parallel", "arbitrary"),
            vmem_limit_bytes=_vmem_limit_bytes(need),
        ),
        cost_estimate=cost,
    )(qi_tab, ki_tab, q, k, v, cos_q, sin_q, cos_k, sin_k)


# ----------------------------------------------------------------------------
# Rotary tables (tiny one-off setup; the rotary math itself runs in-kernel)
# ----------------------------------------------------------------------------
def rotary_tables(T, D, dtype, base=10000.0):
    inv_freq = 1.0 / (base ** (jnp.arange(0, D, 2, dtype=jnp.float32) / D))
    t = jnp.arange(T, dtype=jnp.float32)
    freqs = jnp.outer(t, inv_freq)                         # (T, D//2)
    cos_h, sin_h = jnp.cos(freqs), jnp.sin(freqs)
    cos_f = jnp.concatenate([cos_h, cos_h], axis=-1)       # (T, D)
    sin_f = jnp.concatenate([sin_h, -sin_h], axis=-1)      # signed for rot-half
    scale = _LOG2E / math.sqrt(D)        # fold 1/sqrt(D) and base-2 exp into q
    return ((cos_f * scale).astype(dtype), (sin_f * scale).astype(dtype),
            cos_f.astype(dtype), sin_f.astype(dtype))


# ----------------------------------------------------------------------------
# Full forward pass of CausalSelfAttention
# ----------------------------------------------------------------------------
@partial(jax.jit, static_argnums=(3,), static_argnames=("compute_dtype",))
def causal_self_attention(x, c_attn_w, c_proj_w, n_head, *, compute_dtype=None):
    B, T, C = x.shape
    H = n_head
    D = C // H
    cdt = jnp.dtype(x.dtype) if compute_dtype is None else jnp.dtype(compute_dtype)

    # qkv projection (tiled Pallas matmul), optionally in bf16 with f32 accum.
    qkv = linear(x.astype(cdt).reshape(B * T, C), c_attn_w.astype(cdt))

    # (B, T, 3, H, D) -> (3, B*H, T, D): one XLA transpose for all of q/k/v.
    # TODO(synk): when head_dim % 128 == 0, index heads directly in the
    # attention BlockSpecs (grid (B, H, ...)) to remove this HBM round trip
    # and the inverse transpose of the attention output.
    qkv = qkv.reshape(B, T, 3, H, D).transpose(2, 0, 3, 1, 4)
    qkv = qkv.reshape(3, B * H, T, D)
    qh, kh, vh = qkv[0], qkv[1], qkv[2]

    cos_q, sin_q, cos_k, sin_k = rotary_tables(T, D, cdt)
    yh = flash_causal_attention(qh, kh, vh, cos_q, sin_q, cos_k, sin_k)

    y = yh.reshape(B, H, T, D).transpose(0, 2, 1, 3).reshape(B * T, C)
    out = linear(y, c_proj_w.astype(cdt))          # output projection
    return out.reshape(B, T, C).astype(x.dtype)


# ----------------------------------------------------------------------------
# Pure-JAX reference (f32)
# ----------------------------------------------------------------------------
def _reference_rotary(T, D, base=10000.0):
    inv_freq = 1.0 / (base ** (jnp.arange(0, D, 2, dtype=jnp.float32) / D))
    t = jnp.arange(T, dtype=jnp.float32)
    freqs = jnp.outer(t, inv_freq)
    return jnp.cos(freqs)[None, :, None, :], jnp.sin(freqs)[None, :, None, :]


def _apply_rotary_ref(x, cos, sin):
    d = x.shape[3] // 2
    x1, x2 = x[..., :d], x[..., d:]
    return jnp.concatenate([x1 * cos + x2 * sin, -x1 * sin + x2 * cos], axis=3)


@partial(jax.jit, static_argnums=3)
def reference_forward(x, c_attn_w, c_proj_w, n_head):
    B, T, C = x.shape
    D = C // n_head
    qkv = (x.reshape(B * T, C) @ c_attn_w).reshape(B, T, 3 * C)
    q, k, v = jnp.split(qkv, 3, axis=2)
    q = q.reshape(B, T, n_head, D)
    k = k.reshape(B, T, n_head, D)
    v = v.reshape(B, T, n_head, D)
    cos, sin = _reference_rotary(T, D)
    q = _apply_rotary_ref(q, cos, sin)
    k = _apply_rotary_ref(k, cos, sin)
    qh, kh, vh = (t.transpose(0, 2, 1, 3) for t in (q, k, v))
    s = jnp.einsum("bhqd,bhkd->bhqk", qh, kh) / math.sqrt(D)
    mask = jnp.tril(jnp.ones((T, T), dtype=bool))
    s = jnp.where(mask[None, None], s, -jnp.inf)
    p = jax.nn.softmax(s, axis=-1)
    yh = jnp.einsum("bhqk,bhkd->bhqd", p, vh)
    y = yh.transpose(0, 2, 1, 3).reshape(B * T, C)
    return (y @ c_proj_w).reshape(B, T, C)


if __name__ == "__main__":
    def run_case(B, T, n_embd, n_head, seed, compute_dtype=None,
                 atol=2e-3, rtol=2e-3):
        key = jax.random.PRNGKey(seed)
        kx, kw1, kw2 = jax.random.split(key, 3)
        x = jax.random.normal(kx, (B, T, n_embd), dtype=jnp.float32)
        bound = 1.0 / math.sqrt(n_embd)
        c_attn_w = jax.random.uniform(kw1, (n_embd, 3 * n_embd), jnp.float32,
                                      -bound, bound)
        c_proj_w = jax.random.uniform(kw2, (n_embd, n_embd), jnp.float32,
                                      -bound, bound)
        y = jax.block_until_ready(
            causal_self_attention(x, c_attn_w, c_proj_w, n_head,
                                  compute_dtype=compute_dtype))
        y_ref = reference_forward(x, c_attn_w, c_proj_w, n_head)
        assert y.shape == (B, T, n_embd)
        err = float(jnp.max(jnp.abs(y - y_ref)))
        assert jnp.allclose(y, y_ref, atol=atol, rtol=rtol), f"mismatch: {err}"

    # Small config matching the module: B=2, T=8, n_embd=32, n_head=4 (D=8).
    run_case(2, 8, 32, 4, seed=0)
    # Multi-block flash tiling (bq=256, nq=2), triangular KV schedule,
    # diagonal-only masking, K-tiled projections.
    run_case(2, 512, 128, 4, seed=1)
    # bf16 operands with f32 accumulation (looser tolerance for bf16 rounding).
    run_case(2, 512, 128, 4, seed=2, compute_dtype=jnp.bfloat16,
             atol=6e-2, rtol=6e-2)

    print("KERNEL_OK")
</pallas_src>

<mosaic_0001>
module attributes {stable_mosaic.version = 11 : i64} {
  func.func @_matmul_kernel(%arg0: i32, %arg1: i32, %arg2: i32, %arg3: memref<16x32xf32, #tpu.memory_space<vmem>>, %arg4: memref<32x96xf32, #tpu.memory_space<vmem>>, %arg5: memref<16x96xf32, #tpu.memory_space<vmem>>, %arg6: memref<16x96xf32, #tpu.memory_space<vmem>>) attributes {dimension_semantics = [#tpu.dimension_semantics<parallel>, #tpu.dimension_semantics<parallel>, #tpu.dimension_semantics<arbitrary>], iteration_bounds = array<i64: 1, 1, 1>, scalar_prefetch = 0 : i64, scratch_operands = 1 : i64, tpu.core_type = #tpu.core_type<tc>, window_params = [{transform_indices = @transform_0, window_bounds = array<i64: 16, 32>}, {transform_indices = @transform_1, window_bounds = array<i64: 32, 96>}, {transform_indices = @transform_2, window_bounds = array<i64: 16, 96>}]} {
    %c0 = arith.constant 0 : index
    %c0_0 = arith.constant 0 : index
    %0 = vector.load %arg3[%c0, %c0_0] : memref<16x32xf32, #tpu.memory_space<vmem>>, vector<16x32xf32>
    %c0_1 = arith.constant 0 : index
    %c0_2 = arith.constant 0 : index
    %1 = vector.load %arg4[%c0_1, %c0_2] : memref<32x96xf32, #tpu.memory_space<vmem>>, vector<32x96xf32>
    %cst = arith.constant dense<0.000000e+00> : vector<16x96xf32>
    %2 = tpu.matmul %0, %1, %cst {dimension_numbers = #tpu.dot_dimension_numbers<[1], [0], [0], [1], [0, 0, 1, 1], [], []>} : vector<16x32xf32>, vector<32x96xf32>, vector<16x96xf32> -> vector<16x96xf32>
    %c0_i32 = arith.constant 0 : i32
    %3 = arith.cmpi eq, %arg2, %c0_i32 : i32
    %4 = arith.extui %3 : i1 to i32
    %c0_i32_3 = arith.constant 0 : i32
    %5 = arith.cmpi ne, %4, %c0_i32_3 : i32
    scf.if %5 {
      %c0_8 = arith.constant 0 : index
      %c0_9 = arith.constant 0 : index
      %12 = vector.load %arg6[%c0_8, %c0_9] : memref<16x96xf32, #tpu.memory_space<vmem>>, vector<16x96xf32>
      tpu.vector_store %arg6[%c0_8, %c0_9], %2 {strides = array<i32>} : memref<16x96xf32, #tpu.memory_space<vmem>>, vector<16x96xf32>,
    } else {
    }
    %c0_i32_4 = arith.constant 0 : i32
    %6 = arith.cmpi sgt, %arg2, %c0_i32_4 : i32
    %7 = arith.extui %6 : i1 to i32
    %c0_i32_5 = arith.constant 0 : i32
    %8 = arith.cmpi ne, %7, %c0_i32_5 : i32
    scf.if %8 {
      %c0_8 = arith.constant 0 : index
      %c0_9 = arith.constant 0 : index
      %12 = vector.load %arg6[%c0_8, %c0_9] : memref<16x96xf32, #tpu.memory_space<vmem>>, vector<16x96xf32>
      %13 = arith.addf %12, %2 : vector<16x96xf32>
      %c0_10 = arith.constant 0 : index
      %c0_11 = arith.constant 0 : index
      %14 = vector.load %arg6[%c0_10, %c0_11] : memref<16x96xf32, #tpu.memory_space<vmem>>, vector<16x96xf32>
      tpu.vector_store %arg6[%c0_10, %c0_11], %13 {strides = array<i32>} : memref<16x96xf32, #tpu.memory_space<vmem>>, vector<16x96xf32>,
    } else {
    }
    %c0_i32_6 = arith.constant 0 : i32
    %9 = arith.cmpi eq, %arg2, %c0_i32_6 : i32
    %10 = arith.extui %9 : i1 to i32
    %c0_i32_7 = arith.constant 0 : i32
    %11 = arith.cmpi ne, %10, %c0_i32_7 : i32
    scf.if %11 {
      %c0_8 = arith.constant 0 : index
      %c0_9 = arith.constant 0 : index
      %12 = vector.load %arg6[%c0_8, %c0_9] : memref<16x96xf32, #tpu.memory_space<vmem>>, vector<16x96xf32>
      %c0_10 = arith.constant 0 : index
      %c0_11 = arith.constant 0 : index
      %13 = vector.load %arg5[%c0_10, %c0_11] : memref<16x96xf32, #tpu.memory_space<vmem>>, vector<16x96xf32>
      tpu.vector_store %arg5[%c0_10, %c0_11], %12 {strides = array<i32>} : memref<16x96xf32, #tpu.memory_space<vmem>>, vector<16x96xf32>,
    } else {
    }
    return
  }
  func.func @transform_0(%arg0: i32, %arg1: i32, %arg2: i32) -> (i32, i32) {
    %c0_i32 = arith.constant 0 : i32
    return %arg0, %arg2 : i32, i32
  }
  func.func @transform_1(%arg0: i32, %arg1: i32, %arg2: i32) -> (i32, i32) {
    %c0_i32 = arith.constant 0 : i32
    return %arg2, %arg1 : i32, i32
  }
  func.func @transform_2(%arg0: i32, %arg1: i32, %arg2: i32) -> (i32, i32) {
    %c0_i32 = arith.constant 0 : i32
    return %arg0, %arg1 : i32, i32
  }
}

module attributes {stable_mosaic.version = 11 : i64} {
  func.func @_matmul_kernel(%arg0: i32, %arg1: i32, %arg2: i32, %arg3: memref<16x32xf32, #tpu.memory_space<vmem>>, %arg4: memref<32x32xf32, #tpu.memory_space<vmem>>, %arg5: memref<16x32xf32, #tpu.memory_space<vmem>>, %arg6: memref<16x32xf32, #tpu.memory_space<vmem>>) attributes {dimension_semantics = [#tpu.dimension_semantics<parallel>, #tpu.dimension_semantics<parallel>, #tpu.dimension_semantics<arbitrary>], iteration_bounds = array<i64: 1, 1, 1>, scalar_prefetch = 0 : i64, scratch_operands = 1 : i64, tpu.core_type = #tpu.core_type<tc>, window_params = [{transform_indices = @transform_0, window_bounds = array<i64: 16, 32>}, {transform_indices = @transform_1, window_bounds = array<i64: 32, 32>}, {transform_indices = @transform_2, window_bounds = array<i64: 16, 32>}]} {
    %c0 = arith.constant 0 : index
    %c0_0 = arith.constant 0 : index
    %0 = vector.load %arg3[%c0, %c0_0] : memref<16x32xf32, #tpu.memory_space<vmem>>, vector<16x32xf32>
    %c0_1 = arith.constant 0 : index
    %c0_2 = arith.constant 0 : index
    %1 = vector.load %arg4[%c0_1, %c0_2] : memref<32x32xf32, #tpu.memory_space<vmem>>, vector<32x32xf32>
    %cst = arith.constant dense<0.000000e+00> : vector<16x32xf32>
    %2 = tpu.matmul %0, %1, %cst {dimension_numbers = #tpu.dot_dimension_numbers<[1], [0], [0], [1], [0, 0, 1, 1], [], []>} : vector<16x32xf32>, vector<32x32xf32>, vector<16x32xf32> -> vector<16x32xf32>
    %c0_i32 = arith.constant 0 : i32
    %3 = arith.cmpi eq, %arg2, %c0_i32 : i32
    %4 = arith.extui %3 : i1 to i32
    %c0_i32_3 = arith.constant 0 : i32
    %5 = arith.cmpi ne, %4, %c0_i32_3 : i32
    scf.if %5 {
      %c0_8 = arith.constant 0 : index
      %c0_9 = arith.constant 0 : index
      %12 = vector.load %arg6[%c0_8, %c0_9] : memref<16x32xf32, #tpu.memory_space<vmem>>, vector<16x32xf32>
      tpu.vector_store %arg6[%c0_8, %c0_9], %2 {strides = array<i32>} : memref<16x32xf32, #tpu.memory_space<vmem>>, vector<16x32xf32>,
    } else {
    }
    %c0_i32_4 = arith.constant 0 : i32
    %6 = arith.cmpi sgt, %arg2, %c0_i32_4 : i32
    %7 = arith.extui %6 : i1 to i32
    %c0_i32_5 = arith.constant 0 : i32
    %8 = arith.cmpi ne, %7, %c0_i32_5 : i32
    scf.if %8 {
      %c0_8 = arith.constant 0 : index
      %c0_9 = arith.constant 0 : index
      %12 = vector.load %arg6[%c0_8, %c0_9] : memref<16x32xf32, #tpu.memory_space<vmem>>, vector<16x32xf32>
      %13 = arith.addf %12, %2 : vector<16x32xf32>
      %c0_10 = arith.constant 0 : index
      %c0_11 = arith.constant 0 : index
      %14 = vector.load %arg6[%c0_10, %c0_11] : memref<16x32xf32, #tpu.memory_space<vmem>>, vector<16x32xf32>
      tpu.vector_store %arg6[%c0_10, %c0_11], %13 {strides = array<i32>} : memref<16x32xf32, #tpu.memory_space<vmem>>, vector<16x32xf32>,
    } else {
    }
    %c0_i32_6 = arith.constant 0 : i32
    %9 = arith.cmpi eq, %arg2, %c0_i32_6 : i32
    %10 = arith.extui %9 : i1 to i32
    %c0_i32_7 = arith.constant 0 : i32
    %11 = arith.cmpi ne, %10, %c0_i32_7 : i32
    scf.if %11 {
      %c0_8 = arith.constant 0 : index
      %c0_9 = arith.constant 0 : index
      %12 = vector.load %arg6[%c0_8, %c0_9] : memref<16x32xf32, #tpu.memory_space<vmem>>, vector<16x32xf32>
      %c0_10 = arith.constant 0 : index
      %c0_11 = arith.constant 0 : index
      %13 = vector.load %arg5[%c0_10, %c0_11] : memref<16x32xf32, #tpu.memory_space<vmem>>, vector<16x32xf32>
      tpu.vector_store %arg5[%c0_10, %c0_11], %12 {strides = array<i32>} : memref<16x32xf32, #tpu.memory_space<vmem>>, vector<16x32xf32>,
    } else {
    }
    return
  }
  func.func @transform_0(%arg0: i32, %arg1: i32, %arg2: i32) -> (i32, i32) {
    %c0_i32 = arith.constant 0 : i32
    return %arg0, %arg2 : i32, i32
  }
  func.func @transform_1(%arg0: i32, %arg1: i32, %arg2: i32) -> (i32, i32) {
    %c0_i32 = arith.constant 0 : i32
    return %arg2, %arg1 : i32, i32
  }
  func.func @transform_2(%arg0: i32, %arg1: i32, %arg2: i32) -> (i32, i32) {
    %c0_i32 = arith.constant 0 : i32
    return %arg0, %arg1 : i32, i32
  }
}

module attributes {stable_mosaic.version = 11 : i64} {
  func.func @_flash_attn_kernel(%arg0: i32, %arg1: i32, %arg2: memref<1xi32, #tpu.memory_space<smem>>, %arg3: memref<1xi32, #tpu.memory_space<smem>>, %arg4: memref<1x8x8xf32, #tpu.memory_space<vmem>>, %arg5: memref<1x8x8xf32, #tpu.memory_space<vmem>>, %arg6: memref<1x8x8xf32, #tpu.memory_space<vmem>>, %arg7: memref<8x8xf32, #tpu.memory_space<vmem>>, %arg8: memref<8x8xf32, #tpu.memory_space<vmem>>, %arg9: memref<8x8xf32, #tpu.memory_space<vmem>>, %arg10: memref<8x8xf32, #tpu.memory_space<vmem>>, %arg11: memref<1x8x8xf32, #tpu.memory_space<vmem>>, %arg12: memref<8x128xf32, #tpu.memory_space<vmem>>, %arg13: memref<8x128xf32, #tpu.memory_space<vmem>>, %arg14: memref<8x8xf32, #tpu.memory_space<vmem>>) attributes {dimension_semantics = [#tpu.dimension_semantics<parallel>, #tpu.dimension_semantics<arbitrary>], iteration_bounds = array<i64: 8, 1>, scalar_prefetch = 2 : i64, scratch_operands = 3 : i64, tpu.core_type = #tpu.core_type<tc>, window_params = [{transform_indices = @transform_0, window_bounds = array<i64: 1, 8, 8>}, {transform_indices = @transform_1, window_bounds = array<i64: 1, 8, 8>}, {transform_indices = @transform_2, window_bounds = array<i64: 1, 8, 8>}, {transform_indices = @transform_3, window_bounds = array<i64: 8, 8>}, {transform_indices = @transform_4, window_bounds = array<i64: 8, 8>}, {transform_indices = @transform_5, window_bounds = array<i64: 8, 8>}, {transform_indices = @transform_6, window_bounds = array<i64: 8, 8>}, {transform_indices = @transform_7, window_bounds = array<i64: 1, 8, 8>}]} {
    %0 = arith.index_cast %arg1 : i32 to index
    %1 = memref.load %arg2[%0] : memref<1xi32, #tpu.memory_space<smem>>
    %2 = arith.index_cast %arg1 : i32 to index
    %3 = memref.load %arg3[%2] : memref<1xi32, #tpu.memory_space<smem>>
    %c0_i32 = arith.constant 0 : i32
    %4 = arith.cmpi eq, %3, %c0_i32 : i32
    %5 = arith.extui %4 : i1 to i32
    %c0_i32_0 = arith.constant 0 : i32
    %6 = arith.cmpi ne, %5, %c0_i32_0 : i32
    scf.if %6 {
      %cst = arith.constant -1.000000e+30 : f32
      %35 = vector.broadcast %cst : f32 to vector<8x128xf32>
      %c0_19 = arith.constant 0 : index
      %c0_20 = arith.constant 0 : index
      %36 = vector.load %arg12[%c0_19, %c0_20] : memref<8x128xf32, #tpu.memory_space<vmem>>, vector<8x128xf32>
      tpu.vector_store %arg12[%c0_19, %c0_20], %35 {strides = array<i32>} : memref<8x128xf32, #tpu.memory_space<vmem>>, vector<8x128xf32>,
      %cst_21 = arith.constant 0.000000e+00 : f32
      %37 = vector.broadcast %cst_21 : f32 to vector<8x128xf32>
      %c0_22 = arith.constant 0 : index
      %c0_23 = arith.constant 0 : index
      %38 = vector.load %arg13[%c0_22, %c0_23] : memref<8x128xf32, #tpu.memory_space<vmem>>, vector<8x128xf32>
      tpu.vector_store %arg13[%c0_22, %c0_23], %37 {strides = array<i32>} : memref<8x128xf32, #tpu.memory_space<vmem>>, vector<8x128xf32>,
      %cst_24 = arith.constant 0.000000e+00 : f32
      %39 = vector.broadcast %cst_24 : f32 to vector<8x8xf32>
      %c0_25 = arith.constant 0 : index
      %c0_26 = arith.constant 0 : index
      %40 = vector.load %arg14[%c0_25, %c0_26] : memref<8x8xf32, #tpu.memory_space<vmem>>, vector<8x8xf32>
      tpu.vector_store %arg14[%c0_25, %c0_26], %39 {strides = array<i32>} : memref<8x8xf32, #tpu.memory_space<vmem>>, vector<8x8xf32>,
    } else {
    }
    %c0 = arith.constant 0 : index
    %c0_1 = arith.constant 0 : index
    %c0_2 = arith.constant 0 : index
    %7 = vector.load %arg4[%c0, %c0_1, %c0_2] : memref<1x8x8xf32, #tpu.memory_space<vmem>>, vector<1x8x8xf32>
    %8 = vector.shape_cast %7 : vector<1x8x8xf32> to vector<8x8xf32>
    %c0_3 = arith.constant 0 : index
    %c0_4 = arith.constant 0 : index
    %c0_5 = arith.constant 0 : index
    %9 = vector.load %arg5[%c0_3, %c0_4, %c0_5] : memref<1x8x8xf32, #tpu.memory_space<vmem>>, vector<1x8x8xf32>
    %10 = vector.shape_cast %9 : vector<1x8x8xf32> to vector<8x8xf32>
    %c0_6 = arith.constant 0 : index
    %c0_7 = arith.constant 0 : index
    %c0_8 = arith.constant 0 : index
    %11 = vector.load %arg6[%c0_6, %c0_7, %c0_8] : memref<1x8x8xf32, #tpu.memory_space<vmem>>, vector<1x8x8xf32>
    %12 = vector.shape_cast %11 : vector<1x8x8xf32> to vector<8x8xf32>
    %c0_9 = arith.constant 0 : index
    %c0_10 = arith.constant 0 : index
    %13 = vector.load %arg7[%c0_9, %c0_10] : memref<8x8xf32, #tpu.memory_space<vmem>>, vector<8x8xf32>
    %14 = arith.mulf %8, %13 : vector<8x8xf32>
    %15 = vector.extract_strided_slice %8 {offsets = [0, 4], sizes = [8, 4], strides = [1, 1]} : vector<8x8xf32> to vector<8x4xf32>
    %16 = vector.extract_strided_slice %8 {offsets = [0, 0], sizes = [8, 4], strides = [1, 1]} : vector<8x8xf32> to vector<8x4xf32>
    %17 = tpu.concatenate %15, %16 in 1 : vector<8x4xf32>, vector<8x4xf32> -> vector<8x8xf32>
    %c0_11 = arith.constant 0 : index
    %c0_12 = arith.constant 0 : index
    %18 = vector.load %arg8[%c0_11, %c0_12] : memref<8x8xf32, #tpu.memory_space<vmem>>, vector<8x8xf32>
    %19 = arith.mulf %17, %18 : vector<8x8xf32>
    %20 = arith.addf %14, %19 : vector<8x8xf32>
    %c0_13 = arith.constant 0 : index
    %c0_14 = arith.constant 0 : index
    %21 = vector.load %arg9[%c0_13, %c0_14] : memref<8x8xf32, #tpu.memory_space<vmem>>, vector<8x8xf32>
    %22 = arith.mulf %10, %21 : vector<8x8xf32>
    %23 = vector.extract_strided_slice %10 {offsets = [0, 4], sizes = [8, 4], strides = [1, 1]} : vector<8x8xf32> to vector<8x4xf32>
    %24 = vector.extract_strided_slice %10 {offsets = [0, 0], sizes = [8, 4], strides = [1, 1]} : vector<8x8xf32> to vector<8x4xf32>
    %25 = tpu.concatenate %23, %24 in 1 : vector<8x4xf32>, vector<8x4xf32> -> vector<8x8xf32>
    %c0_15 = arith.constant 0 : index
    %c0_16 = arith.constant 0 : index
    %26 = vector.load %arg10[%c0_15, %c0_16] : memref<8x8xf32, #tpu.memory_space<vmem>>, vector<8x8xf32>
    %27 = arith.mulf %25, %26 : vector<8x8xf32>
    %28 = arith.addf %22, %27 : vector<8x8xf32>
    %29 = arith.cmpi slt, %3, %1 : i32
    %30 = arith.extui %29 : i1 to i32
    %c0_i32_17 = arith.constant 0 : i32
    %31 = arith.cmpi ne, %30, %c0_i32_17 : i32
    scf.if %31 {
      %cst = arith.constant dense<0.000000e+00> : vector<8x8xf32>
      %35 = tpu.matmul %20, %28, %cst {dimension_numbers = #tpu.dot_dimension_numbers<[1], [1], [0], [0], [0, 0, 1, 0], [], []>} : vector<8x8xf32>, vector<8x8xf32>, vector<8x8xf32> -> vector<8x8xf32>
      %c0_19 = arith.constant 0 : index
      %c0_20 = arith.constant 0 : index
      %36 = vector.load %arg12[%c0_19, %c0_20] : memref<8x128xf32, #tpu.memory_space<vmem>>, vector<8x128xf32>
      %cst_21 = arith.constant dense<0xFF800000> : vector<8xf32>
      %37 = vector.multi_reduction <maximumf>, %35, %cst_21 [1] : vector<8x8xf32> to vector<8xf32>
      %38 = vector.shape_cast %37 : vector<8xf32> to vector<8x1xf32>
      %39 = vector.broadcast %38 : vector<8x1xf32> to vector<8x128xf32>
      %40 = arith.maximumf %36, %39 : vector<8x128xf32>
      %41 = arith.subf %36, %40 : vector<8x128xf32>
      %42 = math.exp2 %41 : vector<8x128xf32>
      %43 = vector.extract_strided_slice %40 {offsets = [0, 0], sizes = [8, 8], strides = [1, 1]} : vector<8x128xf32> to vector<8x8xf32>
      %44 = arith.subf %35, %43 : vector<8x8xf32>
      %45 = math.exp2 %44 : vector<8x8xf32>
      %c0_22 = arith.constant 0 : index
      %c0_23 = arith.constant 0 : index
      %46 = vector.load %arg13[%c0_22, %c0_23] : memref<8x128xf32, #tpu.memory_space<vmem>>, vector<8x128xf32>
      %47 = arith.mulf %42, %46 : vector<8x128xf32>
      %cst_24 = arith.constant dense<0.000000e+00> : vector<8xf32>
      %48 = vector.multi_reduction <add>, %45, %cst_24 [1] : vector<8x8xf32> to vector<8xf32>
      %49 = vector.shape_cast %48 : vector<8xf32> to vector<8x1xf32>
      %50 = vector.broadcast %49 : vector<8x1xf32> to vector<8x128xf32>
      %51 = arith.addf %47, %50 : vector<8x128xf32>
      %c0_25 = arith.constant 0 : index
      %c0_26 = arith.constant 0 : index
      %52 = vector.load %arg13[%c0_25, %c0_26] : memref<8x128xf32, #tpu.memory_space<vmem>>, vector<8x128xf32>
      tpu.vector_store %arg13[%c0_25, %c0_26], %51 {strides = array<i32>} : memref<8x128xf32, #tpu.memory_space<vmem>>, vector<8x128xf32>,
      %53 = vector.extract_strided_slice %42 {offsets = [0, 0], sizes = [8, 8], strides = [1, 1]} : vector<8x128xf32> to vector<8x8xf32>
      %c0_27 = arith.constant 0 : index
      %c0_28 = arith.constant 0 : index
      %54 = vector.load %arg14[%c0_27, %c0_28] : memref<8x8xf32, #tpu.memory_space<vmem>>, vector<8x8xf32>
      %55 = arith.mulf %53, %54 : vector<8x8xf32>
      %cst_29 = arith.constant dense<0.000000e+00> : vector<8x8xf32>
      %56 = tpu.matmul %45, %12, %cst_29 {dimension_numbers = #tpu.dot_dimension_numbers<[1], [0], [0], [1], [0, 0, 1, 1], [], []>} : vector<8x8xf32>, vector<8x8xf32>, vector<8x8xf32> -> vector<8x8xf32>
      %57 = arith.addf %55, %56 : vector<8x8xf32>
      %c0_30 = arith.constant 0 : index
      %c0_31 = arith.constant 0 : index
      %58 = vector.load %arg14[%c0_30, %c0_31] : memref<8x8xf32, #tpu.memory_space<vmem>>, vector<8x8xf32>
      tpu.vector_store %arg14[%c0_30, %c0_31], %57 {strides = array<i32>} : memref<8x8xf32, #tpu.memory_space<vmem>>, vector<8x8xf32>,
      %c0_32 = arith.constant 0 : index
      %c0_33 = arith.constant 0 : index
      %59 = vector.load %arg12[%c0_32, %c0_33] : memref<8x128xf32, #tpu.memory_space<vmem>>, vector<8x128xf32>
      tpu.vector_store %arg12[%c0_32, %c0_33], %40 {strides = array<i32>} : memref<8x128xf32, #tpu.memory_space<vmem>>, vector<8x128xf32>,
    } else {
    }
    %32 = arith.cmpi eq, %3, %1 : i32
    %33 = arith.extui %32 : i1 to i32
    %c0_i32_18 = arith.constant 0 : i32
    %34 = arith.cmpi ne, %33, %c0_i32_18 : i32
    scf.if %34 {
      %cst = arith.constant dense<0.000000e+00> : vector<8x8xf32>
      %35 = tpu.matmul %20, %28, %cst {dimension_numbers = #tpu.dot_dimension_numbers<[1], [1], [0], [0], [0, 0, 1, 0], [], []>} : vector<8x8xf32>, vector<8x8xf32>, vector<8x8xf32> -> vector<8x8xf32>
      %36 = tpu.iota {dimensions = array<i32: 0>} : vector<8x8xi32>
      %37 = tpu.iota {dimensions = array<i32: 1>} : vector<8x8xi32>
      %38 = arith.cmpi sgt, %37, %36 : vector<8x8xi32>
      %cst_19 = arith.constant -1.000000e+30 : f32
      %39 = vector.broadcast %cst_19 : f32 to vector<8x8xf32>
      %40 = arith.select %38, %39, %35 : vector<8x8xi1>, vector<8x8xf32>
      %c0_20 = arith.constant 0 : index
      %c0_21 = arith.constant 0 : index
      %41 = vector.load %arg12[%c0_20, %c0_21] : memref<8x128xf32, #tpu.memory_space<vmem>>, vector<8x128xf32>
      %cst_22 = arith.constant dense<0xFF800000> : vector<8xf32>
      %42 = vector.multi_reduction <maximumf>, %40, %cst_22 [1] : vector<8x8xf32> to vector<8xf32>
      %43 = vector.shape_cast %42 : vector<8xf32> to vector<8x1xf32>
      %44 = vector.broadcast %43 : vector<8x1xf32> to vector<8x128xf32>
      %45 = arith.maximumf %41, %44 : vector<8x128xf32>
      %46 = arith.subf %41, %45 : vector<8x128xf32>
      %47 = math.exp2 %46 : vector<8x128xf32>
      %48 = vector.extract_strided_slice %45 {offsets = [0, 0], sizes = [8, 8], strides = [1, 1]} : vector<8x128xf32> to vector<8x8xf32>
      %49 = arith.subf %40, %48 : vector<8x8xf32>
      %50 = math.exp2 %49 : vector<8x8xf32>
      %c0_23 = arith.constant 0 : index
      %c0_24 = arith.constant 0 : index
      %51 = vector.load %arg13[%c0_23, %c0_24] : memref<8x128xf32, #tpu.memory_space<vmem>>, vector<8x128xf32>
      %52 = arith.mulf %47, %51 : vector<8x128xf32>
      %cst_25 = arith.constant dense<0.000000e+00> : vector<8xf32>
      %53 = vector.multi_reduction <add>, %50, %cst_25 [1] : vector<8x8xf32> to vector<8xf32>
      %54 = vector.shape_cast %53 : vector<8xf32> to vector<8x1xf32>
      %55 = vector.broadcast %54 : vector<8x1xf32> to vector<8x128xf32>
      %56 = arith.addf %52, %55 : vector<8x128xf32>
      %c0_26 = arith.constant 0 : index
      %c0_27 = arith.constant 0 : index
      %57 = vector.load %arg13[%c0_26, %c0_27] : memref<8x128xf32, #tpu.memory_space<vmem>>, vector<8x128xf32>
      tpu.vector_store %arg13[%c0_26, %c0_27], %56 {strides = array<i32>} : memref<8x128xf32, #tpu.memory_space<vmem>>, vector<8x128xf32>,
      %58 = vector.extract_strided_slice %47 {offsets = [0, 0], sizes = [8, 8], strides = [1, 1]} : vector<8x128xf32> to vector<8x8xf32>
      %c0_28 = arith.constant 0 : index
      %c0_29 = arith.constant 0 : index
      %59 = vector.load %arg14[%c0_28, %c0_29] : memref<8x8xf32, #tpu.memory_space<vmem>>, vector<8x8xf32>
      %60 = arith.mulf %58, %59 : vector<8x8xf32>
      %cst_30 = arith.constant dense<0.000000e+00> : vector<8x8xf32>
      %61 = tpu.matmul %50, %12, %cst_30 {dimension_numbers = #tpu.dot_dimension_numbers<[1], [0], [0], [1], [0, 0, 1, 1], [], []>} : vector<8x8xf32>, vector<8x8xf32>, vector<8x8xf32> -> vector<8x8xf32>
      %62 = arith.addf %60, %61 : vector<8x8xf32>
      %c0_31 = arith.constant 0 : index
      %c0_32 = arith.constant 0 : index
      %63 = vector.load %arg14[%c0_31, %c0_32] : memref<8x8xf32, #tpu.memory_space<vmem>>, vector<8x8xf32>
      tpu.vector_store %arg14[%c0_31, %c0_32], %62 {strides = array<i32>} : memref<8x8xf32, #tpu.memory_space<vmem>>, vector<8x8xf32>,
      %c0_33 = arith.constant 0 : index
      %c0_34 = arith.constant 0 : index
      %64 = vector.load %arg12[%c0_33, %c0_34] : memref<8x128xf32, #tpu.memory_space<vmem>>, vector<8x128xf32>
      tpu.vector_store %arg12[%c0_33, %c0_34], %45 {strides = array<i32>} : memref<8x128xf32, #tpu.memory_space<vmem>>, vector<8x128xf32>,
      %c0_35 = arith.constant 0 : index
      %c0_36 = arith.constant 0 : index
      %65 = vector.load %arg13[%c0_35, %c0_36] : memref<8x128xf32, #tpu.memory_space<vmem>>, vector<8x128xf32>
      %66 = tpu.reciprocal %65 : vector<8x128xf32> -> vector<8x128xf32>
      %c0_37 = arith.constant 0 : index
      %c0_38 = arith.constant 0 : index
      %67 = vector.load %arg14[%c0_37, %c0_38] : memref<8x8xf32, #tpu.memory_space<vmem>>, vector<8x8xf32>
      %68 = vector.extract_strided_slice %66 {offsets = [0, 0], sizes = [8, 8], strides = [1, 1]} : vector<8x128xf32> to vector<8x8xf32>
      %69 = arith.mulf %67, %68 : vector<8x8xf32>
      %c0_39 = arith.constant 0 : index
      %c0_40 = arith.constant 0 : index
      %c0_41 = arith.constant 0 : index
      %70 = vector.load %arg11[%c0_39, %c0_40, %c0_41] : memref<1x8x8xf32, #tpu.memory_space<vmem>>, vector<1x8x8xf32>
      %71 = vector.shape_cast %70 : vector<1x8x8xf32> to vector<8x8xf32>
      %72 = vector.shape_cast %69 : vector<8x8xf32> to vector<1x8x8xf32>
      tpu.vector_store %arg11[%c0_39, %c0_40, %c0_41], %72 {strides = array<i32>} : memref<1x8x8xf32, #tpu.memory_space<vmem>>, vector<1x8x8xf32>,
    } else {
    }
    return
  }
  func.func @transform_0(%arg0: i32, %arg1: i32, %arg2: memref<1xi32, #tpu.memory_space<smem>>, %arg3: memref<1xi32, #tpu.memory_space<smem>>) -> (i32, i32, i32) {
    %0 = arith.index_cast %arg1 : i32 to index
    %1 = memref.load %arg2[%0] : memref<1xi32, #tpu.memory_space<smem>>
    %c0_i32 = arith.constant 0 : i32
    %c0_i32_0 = arith.constant 0 : i32
    return %arg0, %1, %c0_i32 : i32, i32, i32
  }
  func.func @transform_1(%arg0: i32, %arg1: i32, %arg2: memref<1xi32, #tpu.memory_space<smem>>, %arg3: memref<1xi32, #tpu.memory_space<smem>>) -> (i32, i32, i32) {
    %0 = arith.index_cast %arg1 : i32 to index
    %1 = memref.load %arg3[%0] : memref<1xi32, #tpu.memory_space<smem>>
    %c0_i32 = arith.constant 0 : i32
    %c0_i32_0 = arith.constant 0 : i32
    return %arg0, %1, %c0_i32 : i32, i32, i32
  }
  func.func @transform_2(%arg0: i32, %arg1: i32, %arg2: memref<1xi32, #tpu.memory_space<smem>>, %arg3: memref<1xi32, #tpu.memory_space<smem>>) -> (i32, i32, i32) {
    %0 = arith.index_cast %arg1 : i32 to index
    %1 = memref.load %arg3[%0] : memref<1xi32, #tpu.memory_space<smem>>
    %c0_i32 = arith.constant 0 : i32
    %c0_i32_0 = arith.constant 0 : i32
    return %arg0, %1, %c0_i32 : i32, i32, i32
  }
  func.func @transform_3(%arg0: i32, %arg1: i32, %arg2: memref<1xi32, #tpu.memory_space<smem>>, %arg3: memref<1xi32, #tpu.memory_space<smem>>) -> (i32, i32) {
    %0 = arith.index_cast %arg1 : i32 to index
    %1 = memref.load %arg2[%0] : memref<1xi32, #tpu.memory_space<smem>>
    %c0_i32 = arith.constant 0 : i32
    %c0_i32_0 = arith.constant 0 : i32
    return %1, %c0_i32 : i32, i32
  }
  func.func @transform_4(%arg0: i32, %arg1: i32, %arg2: memref<1xi32, #tpu.memory_space<smem>>, %arg3: memref<1xi32, #tpu.memory_space<smem>>) -> (i32, i32) {
    %0 = arith.index_cast %arg1 : i32 to index
    %1 = memref.load %arg2[%0] : memref<1xi32, #tpu.memory_space<smem>>
    %c0_i32 = arith.constant 0 : i32
    %c0_i32_0 = arith.constant 0 : i32
    return %1, %c0_i32 : i32, i32
  }
  func.func @transform_5(%arg0: i32, %arg1: i32, %arg2: memref<1xi32, #tpu.memory_space<smem>>, %arg3: memref<1xi32, #tpu.memory_space<smem>>) -> (i32, i32) {
    %0 = arith.index_cast %arg1 : i32 to index
    %1 = memref.load %arg3[%0] : memref<1xi32, #tpu.memory_space<smem>>
    %c0_i32 = arith.constant 0 : i32
    %c0_i32_0 = arith.constant 0 : i32
    return %1, %c0_i32 : i32, i32
  }
  func.func @transform_6(%arg0: i32, %arg1: i32, %arg2: memref<1xi32, #tpu.memory_space<smem>>, %arg3: memref<1xi32, #tpu.memory_space<smem>>) -> (i32, i32) {
    %0 = arith.index_cast %arg1 : i32 to index
    %1 = memref.load %arg3[%0] : memref<1xi32, #tpu.memory_space<smem>>
    %c0_i32 = arith.constant 0 : i32
    %c0_i32_0 = arith.constant 0 : i32
    return %1, %c0_i32 : i32, i32
  }
  func.func @transform_7(%arg0: i32, %arg1: i32, %arg2: memref<1xi32, #tpu.memory_space<smem>>, %arg3: memref<1xi32, #tpu.memory_space<smem>>) -> (i32, i32, i32) {
    %0 = arith.index_cast %arg1 : i32 to index
    %1 = memref.load %arg2[%0] : memref<1xi32, #tpu.memory_space<smem>>
    %c0_i32 = arith.constant 0 : i32
    %c0_i32_0 = arith.constant 0 : i32
    return %arg0, %1, %c0_i32 : i32, i32, i32
  }
}

</mosaic_0001>

<bundles_post_ra>
// kernel: causal_self_attention.3
= control target key start
LH: loop header
LB: loop body
LE: loop exit
PB: predicated region body
PF: predicated region fallthrough
CT: control target
= control target key end

     0   :  { %7 = vsyncpa [#allocation4], 0  ;;  %s204_s0 = inlined_call_operand.hbm [shape: f32[16,32], index: 0, kind: input, shape index: {}]   ;;  %s205_s1 = inlined_call_operand.hbm [shape: f32[32,96], index: 1, kind: input, shape index: {}]   ;;  %s206_s2 = inlined_call_operand.vmem [shape: f32[16,96], index: 2, kind: output, shape index: {}]  }
   0x1   :  { %s13_s11 = sshll.u32 %s204_s0, 4  ;;  %s14_s11 = int_to_ptr.hbm [resolvable:$true] %s13_s11 }
   0x2   :  { %8 = vsyncpa [#allocation6], 0  ;;  %s173_s12 = smov [#allocation3]   ;;  %s26_s16 = sshll.u32 %s205_s1, 4  ;;  %s27_s16 = int_to_ptr.hbm [resolvable:$true] %s26_s16 }
   0x3   :  { %s15_s13 = sshll.u32 %s173_s12, 4  ;;  %s174_s17 = smov 128   ;;  %s16_s13 = int_to_ptr.vmem [resolvable:$true] %s15_s13 }
   0x4   :  { %s175_s18 = smov 8   ;;  %s176_s19 = smov [#allocation5]  }
   0x5   :  { %21 = dma.hbm_to_vmem [thread:$0]  %s14_s11, 256, %s16_s13, [#allocation4], %s174_s17, %s174_s17, %s175_s18  }
   0x6   :  { %s28_s20 = sshll.u32 %s176_s19, 4  ;;  %s29_s20 = int_to_ptr.vmem [resolvable:$true] %s28_s20 }
   0x7   :  { %34 = dma.hbm_to_vmem [thread:$0]  %s27_s16, 512, %s29_s20, [#allocation6], %s174_s17, %s174_s17, %s175_s18  }
   0x8   :  { %169 = dma.done.wait [#allocation4], 256  }
   0x9   :  { %170 = vsyncadd [#allocation4], 4294967040 }
   0xa   :  { %171 = dma.done.wait [#allocation6], 512  }
   0xb   :  { %172 = vsyncadd [#allocation6], 4294966784  ;;  %v48_v0 = vld [vmem:[#allocation5 + $0x18] sm:$0xff]  ;;  %v47_v1 = vld [vmem:[#allocation5 + $0x10] sm:$0xff]  ;;  %vm49_vm0 = vcmask 261120   ;;  %vm83_vm1 = vcmask 785408  }
   0xc   :  { %68 = vmatpush.msra.mxu0 %v48_v0  ;;  %113 = vmatpush.msra.mxu1 %v48_v0  ;;  %v46_v2 = vld [vmem:[#allocation5 + $0x8] sm:$0xff]  ;;  %v45_v3 = vld [vmem:[#allocation5] sm:$0xff]  ;;  %v43_v4 = vld [vmem:[#allocation3] sm:$0xff] }
   0xd   :  { %v44_v5 = vld [vmem:[#allocation3 + $0x8] sm:$0xff] }
   0xe   :  { %69 = vmatpush.msra.mxu0 %v47_v1  ;;  %114 = vmatpush.msra.mxu1 %v47_v1 }
  0x10   :  { %70 = vmatpush.msra.mxu0 %v46_v2  ;;  %115 = vmatpush.msra.mxu1 %v46_v2 }
  0x12   :  { %71 = vmatpush.msra.mxu0 %v45_v3  ;;  %116 = vmatpush.msra.mxu1 %v45_v3 }
  0x13   :  { %111 = vmatmul.msk.f32.vlgmr.msra.gmra.mxu0 %vm49_vm0, %v43_v4  ;;  %112 = vmatmul.msk.f32.vlgmr.msra.gmra.mxu1 %vm49_vm0, %v44_v5 }
  0x90   :  { %v73_v6 = vpop.f32.mrf.mxu0  ;;  %v76_v7 = vpop.f32.mrf.mxu1 }
  0x91   :  { %84 = vst.msk [vmem:[#allocation2] sm:$0xff] %vm83_vm1, %v73_v6 }
  0x92   :  { %85 = vst.msk [vmem:[#allocation2 + $0x8] sm:$0xff] %vm83_vm1, %v76_v7 }
  0x98   :  { %v100_v8 = vld [vmem:[#allocation2] sm:$0xff] }
  0x99   :  { %103 = vst.msk [vmem:[%s206_s2] sm:$0xff] %vm83_vm1, %v100_v8  ;;  %v101_v9 = vld [vmem:[#allocation2 + $0x8] sm:$0xff] }
  0x9a   :  { %104 = vst.msk [vmem:[%s206_s2 + $0x8] sm:$0xff] %vm83_vm1, %v101_v9 }
  0x9b   :  { %109 = vsyncpa [#allocation4], 1 }
  0x9c   :  { %110 = vsyncpa [#allocation6], 1 }

// kernel: causal_self_attention.5
= control target key start
LH: loop header
LB: loop body
LE: loop exit
PB: predicated region body
PF: predicated region fallthrough
CT: control target
= control target key end

     0   :  { %s169_s0 = inlined_call_operand.vmem [shape: f32[16,32], index: 0, kind: input, shape index: {}]   ;;  %s170_s1 = inlined_call_operand.vmem [shape: f32[32,32], index: 1, kind: input, shape index: {}]   ;;  %s171_s2 = inlined_call_operand.hbm [shape: f32[16,32], index: 2, kind: output, shape index: {}]  }
   0x1   :  { %v17_v0 = vld [vmem:[%s170_s1 + $0x18] sm:$0xff]  ;;  %v16_v1 = vld [vmem:[%s170_s1 + $0x10] sm:$0xff]  ;;  %v15_v2 = vld [vmem:[%s170_s1 + $0x8] sm:$0xff] }
   0x2   :  { %37 = vmatpush.msra.mxu0 %v17_v0  ;;  %91 = vmatpush.msra.mxu1 %v17_v0 }
   0x3   :  { %7 = vsyncpa [#allocation4], 0  ;;  %v14_v3 = vld [vmem:[%s170_s1] sm:$0xff]  ;;  %vm18_vm0 = vcmask 261120   ;;  %v13_v5 = vld [vmem:[%s169_s0 + $0x8] sm:$0xff]  ;;  %s124_s1 = smov [#allocation3]  }
   0x4   :  { %38 = vmatpush.msra.mxu0 %v16_v1  ;;  %92 = vmatpush.msra.mxu1 %v16_v1  ;;  %v12_v4 = vld [vmem:[%s169_s0] sm:$0xff]  ;;  %s75_s21 = sshll.u32 %s124_s1, 4  ;;  %s77_s24 = sshll.u32 %s171_s2, 4  ;;  %s76_s21 = int_to_ptr.vmem [resolvable:$true] %s75_s21  ;;  %s78_s24 = int_to_ptr.hbm [resolvable:$true] %s77_s24 }
   0x5   :  { %s125_s0 = smov 128   ;;  %s126_s25 = smov 8  }
   0x6   :  { %39 = vmatpush.msra.mxu0 %v15_v2  ;;  %93 = vmatpush.msra.mxu1 %v15_v2 }
   0x8   :  { %40 = vmatpush.msra.mxu0 %v14_v3  ;;  %94 = vmatpush.msra.mxu1 %v14_v3 }
   0x9   :  { %89 = vmatmul.msk.f32.vlgmr.msra.gmra.mxu0 %vm18_vm0, %v12_v4  ;;  %90 = vmatmul.msk.f32.vlgmr.msra.gmra.mxu1 %vm18_vm0, %v13_v5 }
  0x86   :  { %v42_v6 = vpop.f32.mrf.mxu0  ;;  %v45_v7 = vpop.f32.mrf.mxu1 }
  0x87   :  { %52 = vst.msk [vmem:[#allocation2] sm:$0xff] %vm18_vm0, %v42_v6 }
  0x88   :  { %53 = vst.msk [vmem:[#allocation2 + $0x8] sm:$0xff] %vm18_vm0, %v45_v7 }
  0x8e   :  { %v67_v8 = vld [vmem:[#allocation2] sm:$0xff] }
  0x8f   :  { %v68_v9 = vld [vmem:[#allocation2 + $0x8] sm:$0xff]  ;;  %69 = vst.msk [vmem:[#allocation3] sm:$0xff] %vm18_vm0, %v67_v8 }
  0x90   :  { %70 = vst.msk [vmem:[#allocation3 + $0x8] sm:$0xff] %vm18_vm0, %v68_v9 }
  0x91   :  { %83 = dma.vmem_to_hbm [thread:$0]  %s76_s21, 256, %s78_s24, [#allocation4], %s125_s0, %s125_s0, %s126_s25  }
  0x92   :  { %122 = dma.done.wait [#allocation4], 256  }
  0x93   :  { %123 = vsyncadd [#allocation4], 4294967040 }
  0x94   :  { %88 = vsyncpa [#allocation4], 1 }

// kernel: causal_self_attention.4
= control target key start
LH: loop header
LB: loop body
LE: loop exit
PB: predicated region body
PF: predicated region fallthrough
CT: control target
= control target key end

     0   :  { %s1015_s13 = smov 0   ;;  %s1017_s14 = smov 0   ;;  %s1101_s0 = inlined_call_operand.<no memory space> [shape: s32[1], index: 0, kind: input, shape index: {}, may-alias: {0,1}]   ;;  %s1102_s1 = inlined_call_operand.<no memory space> [shape: s32[1], index: 1, kind: input, shape index: {}, may-alias: {0,1}]   ;;  %s1103_s2 = inlined_call_operand.vmem [shape: f32[8,8,8], index: 2, kind: input, shape index: {}]   ;;  %s1104_s3 = inlined_call_operand.vmem [shape: f32[8,8,8], index: 3, kind: input, shape index: {}]   ;;  %s1105_s4 = inlined_call_operand.vmem [shape: f32[8,8,8], index: 4, kind: input, shape index: {}]   ;;  %s1106_s5 = inlined_call_operand.vmem [shape: f32[8,8], index: 5, kind: input, shape index: {}]   ;;  %s1107_s6 = inlined_call_operand.vmem [shape: f32[8,8], index: 6, kind: input, shape index: {}]   ;;  %s1108_s7 = inlined_call_operand.vmem [shape: f32[8,8], index: 7, kind: input, shape index: {}]   ;;  %s1109_s8 = inlined_call_operand.vmem [shape: f32[8,8], index: 8, kind: input, shape index: {}]   ;;  %s1110_s9 = inlined_call_operand.vmem [shape: f32[8,8,8], index: 9, kind: output, shape index: {}]  }
   0x1   :  { %1113 = sst [smem:[#allocation11_spill]] %s1103_s2  ;;  %s1019_s15 = smov 0  }
   0x2   :  { %1114 = sst [smem:[#allocation12_spill]] %s1104_s3 }
   0x3   :  { %14 = sst [smem:[#allocation6]] %s1101_s0 }
   0x4   :  { %15 = sst [smem:[#allocation7]] %s1102_s1 }
   0x5 LB: > { %1115 = sst [smem:[#allocation8_spill]] %s949_s14  ;;  %s33_s0 = sadd.s32 1, %s949_s14  ;;  %s953_s15 = sphi %s1019_s15, %s21_s15   ;;  %s949_s14 = sphi %s1017_s14, %s1122_s14   ;;  %s945_s13 = sphi %s1015_s13, %s1121_s13  }
   0x6   : > { %1116 = sst [smem:[#allocation9_spill]] %s953_s15  ;;  %p873_p0 = scmp.ge.s32.totalorder %s953_s15, 1 }
   0x7   : > { %p35_p1 = scmp.ge.s32.totalorder %s33_s0, 8  ;;  %p353_p2 = scmp.lt.s32.totalorder %s953_s15, 9 }
   0x9   : > { %s1124_s0 = smov (%p35_p1, %s33_s0), 0  ;;  %p354_p3 = pnand %p873_p0, %p353_p2 }
   0xa   : > { %1117 = sst [smem:[#allocation10_spill]] %s1124_s0  ;;  %p428_p4 = scmp.lt.s32.totalorder (!%p354_p3), %s945_s13, 7 }
   0xb   : > { %357 = sbr.rel (%p354_p3) target bundleno = 958 (0x3be), region = 48  ;;  %s1033_s1 = sld [smem:[#allocation6]] (!%p354_p3) }
   0xc   : > { %s1035_s16 = sld [smem:[#allocation7]] (!%p354_p3) }
   0xd   : > { %s1118_s2 = sld [smem:[#allocation11_spill]] (!%p354_p3) }
   0xe   : > { %s1119_s3 = sld [smem:[#allocation12_spill]] (!%p354_p3) }
  0x10   : > { %s1126_s13 = smov (!%p428_p4, %s945_s13), 7 }
  0x11   : > { %p430_p5 = scmp.lt.s32.totalorder %s1033_s1, 0 }
  0x12   : > { %p439_p6 = scmp.lt.s32.totalorder %s1035_s16, 0  ;;  %p882_p7 = scmp.ne.s32.totalorder %s1035_s16, 0 }
  0x13   : > { %s431_s17 = scalar_select %p430_p5, %s1033_s1, 0 }
  0x14   : > { %s440_s18 = scalar_select %p439_p6, %s1035_s16, 0 }
  0x15   : > { %s432_s19 = sadd.s32 %s431_s17, %s1126_s13  ;;  %s877_s20 = sshll.u32 %s431_s17, 3 }
  0x16   : > { %s1041_s21 = sshll.u32 %s432_s19, 3  ;;  %s441_s22 = sadd.s32 %s440_s18, %s1126_s13 }
  0x17   : > { %s434_s25 = scalar_lea.vmem %s1118_s2, %s1041_s21  ;;  %s875_s26 = sshll.u32 %s441_s22, 3 }
  0x18   : > { %s443_s29 = scalar_lea.vmem %s1119_s3, %s875_s26  ;;  %s452_s11 = scalar_lea.vmem %s1105_s4, %s875_s26 }
  0x19   : > { %s458_s19 = scalar_lea.vmem %s1106_s5, %s877_s20  ;;  %s464_s13 = scalar_lea.vmem %s1107_s6, %s877_s20 }
  0x1a   : > { %s879_s15 = sshll.u32 %s440_s18, 3  ;;  %s485_s26 = scalar_lea.vmem %s1110_s9, %s1041_s21 }
  0x1b   : > { %s470_s22 = scalar_lea.vmem %s1108_s7, %s879_s15  ;;  %s476_s28 = scalar_lea.vmem %s1109_s8, %s879_s15 }
  0x1c   : > { %492 = sbr.rel (%p882_p7) target bundleno = 37 (0x25), region = 52 }
  0x21   : > { %vm495_vm0 = vcmask 64512   ;;  %v955_v0 = vmov -1e+30   ;;  %v956_v1 = vmov 0.0  }
  0x22   : > { %493 = vst [vmem:[#allocation2] sm:$0xff] %v955_v0 }
  0x23   : > { %494 = vst [vmem:[#allocation3] sm:$0xff] %v956_v1 }
  0x24   : > { %496 = vst.msk [vmem:[#allocation4] sm:$0xff] %vm495_vm0, %v956_v1 }
  0x25 PF: > { %v498_v2 = vld [vmem:[%s443_s29] sm:$0xff]  ;;  %s957_s14 = smov 124   ;;  %s958_s2 = smov 4   ;;  %vm509_vm1 = vcmask 31744  }
  0x26   : > { %v497_v3 = vld [vmem:[%s434_s25] sm:$0xff]  ;;  %517 = vrot.lane.b32.xlu1 %v498_v2, %s957_s14  ;;  %p883_p8 = scmp.ge.s32.totalorder %s1035_s16, %s1033_s1 }
  0x27   : > { %503 = vrot.lane.b32.xlu0 %v497_v3, %s957_s14  ;;  %v499_v4 = vld [vmem:[%s452_s11] sm:$0xff] }
  0x28   : > { %v514_v7 = vld [vmem:[%s470_s22] sm:$0xff] }
  0x29   : > { %v500_v8 = vld [vmem:[%s458_s19] sm:$0xff]  ;;  %v515_v11 = vmul.f32 %v514_v7, %v498_v2 }
  0x2a   : > { %v524_v9 = vld [vmem:[%s476_s28] sm:$0xff]  ;;  %v501_v12 = vmul.f32 %v500_v8, %v497_v3 }
  0x2b   : > { %v511_v10 = vld [vmem:[%s464_s13] sm:$0xff] }
  0x2e   : > { %520 = vrot.lane.b32.xlu1 %v498_v2, %s958_s2 }
  0x2f   : > { %506 = vrot.lane.b32.xlu0 %v497_v3, %s958_s2 }
  0x98   : > { %v518_v5 = vpop.permute.xlu1 %517 }
  0x99   : > { %v504_v6 = vpop.permute.xlu0 %503 }
  0xa0   : > { %v521_v13 = vpop.permute.xlu1 %520 }
  0xa1   : > { %v507_v14 = vpop.permute.xlu0 %506  ;;  %v523_v15 = vsel %vm509_vm1, %v518_v5, %v521_v13  ;;  %530 = sbr.rel (%p883_p8) target bundleno = 553 (0x229), region = 56 }
  0xa2   : > { %v510_v16 = vsel %vm509_vm1, %v504_v6, %v507_v14  ;;  %v525_v17 = vmul.f32 %v524_v9, %v523_v15 }
  0xa3   : > { %v512_v18 = vmul.f32 %v511_v10, %v510_v16 }
  0xa4   : > { %v526_v19 = vadd.f32 %v525_v17, %v515_v11 }
  0xa5   : > { %v513_v20 = vadd.f32 %v512_v18, %v501_v12 }
  0xa6   : > { %vm531_vm2 = vcmask 64512   ;;  %594 = vmatpush.msra.mxu1 %v499_v4  ;;  %v558_v23 = vld [vmem:[#allocation2] sm:$0xff]  ;;  %v567_v31 = vld [vmem:[#allocation3] sm:$0xff]  ;;  %v574_v35 = vld [vmem:[#allocation4] sm:$0xff] }
  0xa7   : > { %884 = vmatpush.xpose.msk.msra.mxu0 %vm531_vm2, %v526_v19 }
  0xaa   : > { %885 = vmatmul.msk.f32.vlgmr.msra.gmra.mxu0 %vm531_vm2, %v513_v20 }
 0x127   : > { %v555_v21 = vpop.f32.mrf.mxu0 }
 0x128   : > { %v559_v22 = vsel %vm531_vm2, %v555_v21, -inf }
 0x129   : > { %560 = vmax.xlane.f32.xlu0 %v559_v22 }
 0x19c   : > { %v561_v24 = vpop.xlane.xlu0 %560 }
 0x19d   : > { %v562_v25 = vmax.f32 %v558_v23, %v561_v24 }
 0x19f   : > { %v563_v26 = vsub.f32 %v558_v23, %v562_v25  ;;  %v565_v27 = vsub.f32 %v555_v21, %v562_v25  ;;  %601 = vst [vmem:[#allocation2] sm:$0xff] %v562_v25 }
 0x1a1   : > { %921 = vpow2.f32 %v565_v27 }
 0x1a2   : > { %923 = vpow2.f32 %v563_v26 }
 0x1a7   : > { %v922_v28 = vpop.eup %921 }
 0x1a8   : > { %886 = vmatmul.msk.f32.vlgmr.msra.gmra.mxu1 %vm531_vm2, %v922_v28  ;;  %v569_v29 = vsel %vm531_vm2, %v922_v28, 0.0  ;;  %v924_v30 = vpop.eup %923 }
 0x1a9   : > { %570 = vadd.xlane.f32.xlu0 %v569_v29  ;;  %v568_v32 = vmul.f32 %v924_v30, %v567_v31  ;;  %v575_v36 = vmul.f32 %v924_v30, %v574_v35 }
 0x21c   : > { %v571_v33 = vpop.xlane.xlu0 %570 }
 0x21d   : > { %v572_v34 = vadd.f32 %v571_v33, %v568_v32 }
 0x21f   : > { %573 = vst [vmem:[#allocation3] sm:$0xff] %v572_v34 }
 0x225   : > { %v596_v37 = vpop.f32.mrf.mxu1 }
 0x226   : > { %v599_v38 = vadd.f32 %v596_v37, %v575_v36 }
 0x228   : > { %600 = vst.msk [vmem:[#allocation4] sm:$0xff] %vm531_vm2, %v599_v38 }
 0x229 PF: > { %p887_p9 = scmp.ne.s32.totalorder %s1035_s16, %s1033_s1 }
 0x22b   : > { %605 = sbr.rel (%p887_p9) target bundleno = 958 (0x3be), region = 60 }
 0x230   : > { %vm606_vm3 = vcmask 64512   ;;  %675 = vmatpush.msra.mxu1 %v499_v4  ;;  %v633_v39 = vlaneseq  ;;  %v639_v45 = vld [vmem:[#allocation2] sm:$0xff]  ;;  %v648_v53 = vld [vmem:[#allocation3] sm:$0xff]  ;;  %v655_v57 = vld [vmem:[#allocation4] sm:$0xff] }
 0x231   : > { %888 = vmatpush.xpose.msk.msra.mxu0 %vm606_vm3, %v526_v19 }
 0x232   : > { %v634_v40 = vshrl.u32 %v633_v39, 7  ;;  %v636_v41 = vand.u32 127, %v633_v39 }
 0x234   : > { %889 = vmatmul.msk.f32.vlgmr.msra.gmra.mxu0 %vm606_vm3, %v513_v20  ;;  %vm637_vm4 = vcmp.gt.s32.totalorder %v636_v41, %v634_v40 }
 0x2b1   : > { %v630_v42 = vpop.f32.mrf.mxu0 }
 0x2b2   : > { %v638_v43 = vsel %vm637_vm4, -1e+30, %v630_v42 }
 0x2b3   : > { %v640_v44 = vsel %vm606_vm3, %v638_v43, -inf }
 0x2b4   : > { %641 = vmax.xlane.f32.xlu0 %v640_v44 }
 0x327   : > { %v642_v46 = vpop.xlane.xlu0 %641 }
 0x328   : > { %v643_v47 = vmax.f32 %v639_v45, %v642_v46 }
 0x32a   : > { %v644_v48 = vsub.f32 %v639_v45, %v643_v47  ;;  %v646_v49 = vsub.f32 %v638_v43, %v643_v47  ;;  %682 = vst [vmem:[#allocation2] sm:$0xff] %v643_v47 }
 0x32c   : > { %925 = vpow2.f32 %v646_v49 }
 0x32d   : > { %927 = vpow2.f32 %v644_v48 }
 0x332   : > { %v926_v50 = vpop.eup %925 }
 0x333   : > { %890 = vmatmul.msk.f32.vlgmr.msra.gmra.mxu1 %vm606_vm3, %v926_v50  ;;  %v650_v51 = vsel %vm606_vm3, %v926_v50, 0.0  ;;  %v928_v52 = vpop.eup %927 }
 0x334   : > { %651 = vadd.xlane.f32.xlu0 %v650_v51  ;;  %v649_v54 = vmul.f32 %v928_v52, %v648_v53  ;;  %v656_v58 = vmul.f32 %v928_v52, %v655_v57 }
 0x3a7   : > { %v652_v55 = vpop.xlane.xlu0 %651 }
 0x3a8   : > { %v653_v56 = vadd.f32 %v652_v55, %v649_v54 }
 0x3aa   : > { %654 = vst [vmem:[#allocation3] sm:$0xff] %v653_v56  ;;  %929 = vrcp.f32 %v653_v56  ;;  %v695_v0 = vand.u32 2147483648, %v653_v56  ;;  %v693_v2 = vand.u32 2147483647, %v653_v56  ;;  %vm689_vm6 = vweird.f32 %v653_v56 }
 0x3ac   : > { %v696_v4 = vor.u32 1.1754944e-38, %v695_v0  ;;  %vm694_vm8 = vcmp.eq.f32.partialorder %v693_v2, 8.507059e+37 }
 0x3b0   : > { %v930_v59 = vpop.eup %929  ;;  %v677_v60 = vpop.f32.mrf.mxu1 }
 0x3b1   : > { %v685_v61 = vmul.f32 %v930_v59, %v653_v56  ;;  %v680_v62 = vadd.f32 %v677_v60, %v656_v58  ;;  %vm690_vm5 = vweird.f32 %v930_v59 }
 0x3b2   : > { %vm691_vm7 = vmor %vm689_vm6, %vm690_vm5 }
 0x3b3   : > { %v686_v63 = vsub.f32 1.0, %v685_v61  ;;  %681 = vst.msk [vmem:[#allocation4] sm:$0xff] %vm606_vm3, %v680_v62 }
 0x3b5   : > { %v687_v1 = vmul.f32 %v930_v59, %v686_v63 }
 0x3b7   : > { %v688_v3 = vadd.f32 %v930_v59, %v687_v1 }
 0x3b9   : > { %v692_v5 = vsel %vm691_vm7, %v930_v59, %v688_v3 }
 0x3ba   : > { %v697_v6 = vsel %vm694_vm8, %v696_v4, %v692_v5  ;;  %v698_v7 = vld [vmem:[#allocation4] sm:$0xff] }
 0x3bb   : > { %v699_v8 = vmul.f32 %v698_v7, %v697_v6 }
 0x3bd   : > { %700 = vst.msk [vmem:[%s485_s26] sm:$0xff] %vm606_vm3, %v699_v8 }
 0x3be PF: > { %s1120_s0 = sld [smem:[#allocation9_spill]] }
 0x3bf   : > { %s1121_s13 = sld [smem:[#allocation8_spill]] }
 0x3c0   : > { %s1122_s14 = sld [smem:[#allocation10_spill]] }
 0x3c4   : > { %s21_s15 = sadd.s32 1, %s1120_s0  }
 0x3c5   : > { %p18_p10 = scmp.ge.s32.totalorder %s21_s15, 10  }
 0x3c7   :  { %20 = sbr.rel (!%p18_p10) target bundleno = 5 (0x5), region = 108 }

</bundles_post_ra>
